<compile_context>
chip_gen: v6e
topology: v6e:2x2x1
jax: 0.10.0
libtpu: 0.0.40
codegen_flags: <defaults>
</compile_context>

<pallas_src>
import functools

import jax
import jax.numpy as jnp
from jax.experimental import pallas as pl
from jax.experimental.pallas import tpu as pltpu


_LANE = 128                              # vreg lane width
_MAX_PIXEL_TILE = 2048                   # lanes per block; HBM roofline flat above ~512-1024
_TILE_VMEM_BUDGET = 8 * 1024 * 1024      # budget for pipeline buffers + f32 temporaries
_VMEM_LIMIT_BYTES = 32 * 1024 * 1024     # fits v5e/v6e (128 MiB) and v7x (64 MiB/TC)
_MIN_GRID_STEPS = 8                      # >= 4 steps per TensorCore on v7x megacore
_MIN_PIXELS_FOR_PALLAS = 1024            # below this, XLA's fused einsum wins


def _cdiv(a, b):
    return -(-a // b)


def _combination_kernel(x_ref, wt_ref, b_ref, o_ref):
    """One pixel tile of the fused net1->cat(depth)->net2 forward.

    x_ref : (C,  tp)  pixel columns, channels on sublanes (compute dtype)
    wt_ref: (C2, C)   folded weight, transposed           (compute dtype)
    b_ref : (C2, 1)   folded bias                         (f32)
    o_ref : (C2, tp)  lane-dense output tile
    """
    y = jnp.dot(wt_ref[...], x_ref[...], preferred_element_type=jnp.float32)
    o_ref[...] = (y + b_ref[...]).astype(o_ref.dtype)


def _resident_spec(shape):
    # Grid-invariant operands (constant index_map): single-buffer them so the
    # pipeline does not keep two VMEM copies of the (tiny) weights/bias.
    nd = len(shape)
    return pl.BlockSpec(shape, lambda *_: (0,) * nd, pipeline_mode=pl.Buffered(1))


def _pick_pixel_tile(n_maps, n_pix, c_in, c_out, cb, ob):
    """Lane-tile (pixel) width: VMEM-budgeted, multiple of 128, enough grid steps."""
    if n_pix <= _LANE:
        return n_pix                                   # full-dim block (always legal)
    # Per-lane footprint: double-buffered x and out blocks + f32 matmul temp.
    bytes_per_lane = 2 * c_in * cb + 2 * c_out * ob + c_out * 4
    tp = _TILE_VMEM_BUDGET // bytes_per_lane
    tp = min(tp, _MAX_PIXEL_TILE, n_pix)
    # Guarantee enough total grid steps for v7x core-sharding + pipeline overlap.
    steps_wanted = max(1, _cdiv(_MIN_GRID_STEPS, n_maps))
    tp = min(tp, _cdiv(n_pix, steps_wanted))
    tp = max(_LANE, (tp // _LANE) * _LANE)             # lane-aligned; ragged last block OK
    return tp


def _fused_combination_pallas(x3, w_eff_t, b_eff, out_dtype):
    """x3: (N, C, P) channels-on-sublanes / pixels-on-lanes.  Returns (N, C2, P)."""
    N, C, P = x3.shape
    C2 = w_eff_t.shape[0]
    cb = jnp.dtype(x3.dtype).itemsize
    ob = jnp.dtype(out_dtype).itemsize

    tp = _pick_pixel_tile(N, P, C, C2, cb, ob)
    grid = (N, _cdiv(P, tp))

    flops = 2 * N * P * C * C2
    bytes_accessed = N * C * P * cb + N * C2 * P * ob + C * C2 * cb + C2 * 4

    return pl.pallas_call(
        _combination_kernel,
        out_shape=jax.ShapeDtypeStruct((N, C2, P), out_dtype),
        grid_spec=pltpu.PrefetchScalarGridSpec(
            num_scalar_prefetch=0,
            grid=grid,
            in_specs=[
                # streamed pixel tiles of one depth/feature map
                pl.BlockSpec((pl.Squeezed(), C, tp), lambda n, j: (n, 0, j)),
                _resident_spec((C2, C)),               # folded weight (transposed)
                _resident_spec((C2, 1)),               # folded bias
            ],
            out_specs=pl.BlockSpec((pl.Squeezed(), C2, tp), lambda n, j: (n, 0, j)),
        ),
        compiler_params=pltpu.CompilerParams(
            dimension_semantics=("parallel", "parallel"),
            vmem_limit_bytes=_VMEM_LIMIT_BYTES,
        ),
        cost_estimate=pl.CostEstimate(
            flops=flops, transcendentals=0, bytes_accessed=bytes_accessed),
    )(x3, w_eff_t, b_eff)


@functools.partial(jax.jit, static_argnames=("compute_dtype", "out_dtype"))
def combination_forward(x, params, *, compute_dtype=None, out_dtype=None):
    """Forward pass of `Combination` with net1/net2 = per-pixel channel linears.

    x: (B, T, C, H, W)  ->  (B, T, C2, H, W)
    """
    w1, b1, w2, b2 = params["w1"], params["b1"], params["w2"], params["b2"]
    B, T, C, H, W = x.shape
    C1 = w1.shape[1]
    C2 = w2.shape[1]
    assert w2.shape[0] == C1 + 1, "net2 input must be cat((net1_out, depth), channel)"

    cdt = jnp.dtype(compute_dtype) if compute_dtype is not None else x.dtype
    odt = jnp.dtype(out_dtype) if out_dtype is not None else x.dtype

    # Fold net1 -> cat(depth) -> net2 into one affine map (done once, in f32):
    #   y = (x @ W1 + b1) @ W2[:C1] + x[..., -1:] * W2[C1] + b2
    #     = x @ W_eff + b_eff
    w2a = w2[:C1].astype(jnp.float32)                 # (C1, C2)
    w2d = w2[C1].astype(jnp.float32)                  # (C2,)  depth-channel row
    w_eff = w1.astype(jnp.float32) @ w2a              # (C, C2)
    w_eff = w_eff.at[C - 1].add(w2d)                  # depth = last input channel
    b_eff = b1.astype(jnp.float32) @ w2a + b2.astype(jnp.float32)   # (C2,)

    # Layout-native view: (B*T, C, H*W) — channels on sublanes, pixels on lanes.
    # This reshape is free (no transpose), so no HBM layout passes around the call.
    N, P = B * T, H * W
    x3 = x.reshape(N, C, P)

    if N * P < _MIN_PIXELS_FOR_PALLAS:
        # Tiny problems: pallas_call launch / pipeline setup dwarfs the matmul.
        y = jnp.einsum("ncp,cd->ndp", x3.astype(jnp.float32), w_eff)
        y = (y + b_eff[None, :, None]).astype(odt)
    else:
        w_eff_t = jnp.transpose(w_eff).astype(cdt)    # (C2, C), tiny
        b_col = b_eff.reshape(C2, 1)                  # f32
        y = _fused_combination_pallas(x3.astype(cdt), w_eff_t, b_col, odt)

    return y.reshape(B, T, C2, H, W)


if __name__ == "__main__":
    key = jax.random.PRNGKey(0)
    k_x, k_w1, k_b1, k_w2, k_b2 = jax.random.split(key, 5)

    # Small shapes consistent with the module: an RGB-D video clip.
    B, T, C, H, W = 2, 8, 4, 16, 16      # input[:, :, -1] is the depth channel
    C1, C2 = 8, 16                       # net1: C -> C1 features, net2: (C1+1) -> C2

    x = jax.random.normal(k_x, (B, T, C, H, W), dtype=jnp.float32)

    def uniform(k, shape, fan_in):
        bound = 1.0 / (fan_in ** 0.5)
        return jax.random.uniform(k, shape, minval=-bound, maxval=bound,
                                  dtype=jnp.float32)

    params = dict(
        w1=uniform(k_w1, (C, C1), C),
        b1=uniform(k_b1, (C1,), C),
        w2=uniform(k_w2, (C1 + 1, C2), C1 + 1),
        b2=uniform(k_b2, (C2,), C1 + 1),
    )

    # f32 path through the Pallas kernel (N*P = 4096 pixels > dispatch threshold).
    out = jax.block_until_ready(combination_forward(x, params))

    # Pure-JAX reference implementing the PyTorch forward literally:
    #   depth = input[:, :, -1:, :, :]; x1 = net1(input)
    #   x1 = cat((x1, depth), dim=2);   out = net2(x1)
    x_cl = jnp.transpose(x, (0, 1, 3, 4, 2))                 # (B, T, H, W, C)
    h = x_cl @ params["w1"] + params["b1"]
    h_cat = jnp.concatenate([h, x_cl[..., -1:]], axis=-1)    # cat along channels
    ref = jnp.transpose(h_cat @ params["w2"] + params["b2"], (0, 1, 4, 2, 3))

    assert out.shape == (B, T, C2, H, W), out.shape
    max_err = float(jnp.max(jnp.abs(out - ref)))
    assert max_err < 1e-4, max_err

    # bf16 compute path (halves the x / weight read streams on v6e & v7x);
    # looser tolerance against the f32 reference.
    out_bf16 = jax.block_until_ready(
        combination_forward(x, params, compute_dtype=jnp.bfloat16))
    assert jnp.allclose(out_bf16.astype(jnp.float32), ref, atol=5e-2, rtol=5e-2)

    print("KERNEL_OK")
</pallas_src>

<mosaic_0001>
module attributes {stable_mosaic.version = 11 : i64} {
  func.func @_combination_kernel(%arg0: i32, %arg1: i32, %arg2: memref<1x4x256xf32, #tpu.memory_space<vmem>>, %arg3: memref<16x4xf32, #tpu.memory_space<vmem>>, %arg4: memref<16x1xf32, #tpu.memory_space<vmem>>, %arg5: memref<1x16x256xf32, #tpu.memory_space<vmem>>) attributes {dimension_semantics = [#tpu.dimension_semantics<parallel>, #tpu.dimension_semantics<parallel>], iteration_bounds = array<i64: 16, 1>, scalar_prefetch = 0 : i64, scratch_operands = 0 : i64, tpu.core_type = #tpu.core_type<tc>, window_params = [{transform_indices = @transform_0, window_bounds = array<i64: 1, 4, 256>}, {pipeline_mode = #tpu.pipeline_mode<synchronous>, transform_indices = @transform_1, window_bounds = array<i64: 16, 4>}, {pipeline_mode = #tpu.pipeline_mode<synchronous>, transform_indices = @transform_2, window_bounds = array<i64: 16, 1>}, {transform_indices = @transform_3, window_bounds = array<i64: 1, 16, 256>}]} {
    %c0 = arith.constant 0 : index
    %c0_0 = arith.constant 0 : index
    %0 = vector.load %arg3[%c0, %c0_0] : memref<16x4xf32, #tpu.memory_space<vmem>>, vector<16x4xf32>
    %c0_1 = arith.constant 0 : index
    %c0_2 = arith.constant 0 : index
    %c0_3 = arith.constant 0 : index
    %1 = vector.load %arg2[%c0_1, %c0_2, %c0_3] : memref<1x4x256xf32, #tpu.memory_space<vmem>>, vector<1x4x256xf32>
    %2 = vector.shape_cast %1 : vector<1x4x256xf32> to vector<4x256xf32>
    %cst = arith.constant dense<0.000000e+00> : vector<16x256xf32>
    %3 = tpu.matmul %0, %2, %cst {dimension_numbers = #tpu.dot_dimension_numbers<[1], [0], [0], [1], [0, 0, 1, 1], [], []>} : vector<16x4xf32>, vector<4x256xf32>, vector<16x256xf32> -> vector<16x256xf32>
    %c0_4 = arith.constant 0 : index
    %c0_5 = arith.constant 0 : index
    %4 = vector.load %arg4[%c0_4, %c0_5] : memref<16x1xf32, #tpu.memory_space<vmem>>, vector<16x1xf32>
    %5 = vector.broadcast %4 : vector<16x1xf32> to vector<16x256xf32>
    %6 = arith.addf %3, %5 : vector<16x256xf32>
    %c0_6 = arith.constant 0 : index
    %c0_7 = arith.constant 0 : index
    %c0_8 = arith.constant 0 : index
    %7 = vector.load %arg5[%c0_6, %c0_7, %c0_8] : memref<1x16x256xf32, #tpu.memory_space<vmem>>, vector<1x16x256xf32>
    %8 = vector.shape_cast %7 : vector<1x16x256xf32> to vector<16x256xf32>
    %9 = vector.shape_cast %6 : vector<16x256xf32> to vector<1x16x256xf32>
    tpu.vector_store %arg5[%c0_6, %c0_7, %c0_8], %9 {strides = array<i32>} : memref<1x16x256xf32, #tpu.memory_space<vmem>>, vector<1x16x256xf32>,
    return
  }
  func.func @transform_0(%arg0: i32, %arg1: i32) -> (i32, i32, i32) {
    %c0_i32 = arith.constant 0 : i32
    %c0_i32_0 = arith.constant 0 : i32
    return %arg0, %c0_i32, %arg1 : i32, i32, i32
  }
  func.func @transform_1(%arg0: i32, %arg1: i32) -> (i32, i32) {
    %c0_i32 = arith.constant 0 : i32
    %c0_i32_0 = arith.constant 0 : i32
    %c0_i32_1 = arith.constant 0 : i32
    return %c0_i32, %c0_i32_0 : i32, i32
  }
  func.func @transform_2(%arg0: i32, %arg1: i32) -> (i32, i32) {
    %c0_i32 = arith.constant 0 : i32
    %c0_i32_0 = arith.constant 0 : i32
    %c0_i32_1 = arith.constant 0 : i32
    return %c0_i32, %c0_i32_0 : i32, i32
  }
  func.func @transform_3(%arg0: i32, %arg1: i32) -> (i32, i32, i32) {
    %c0_i32 = arith.constant 0 : i32
    %c0_i32_0 = arith.constant 0 : i32
    return %arg0, %c0_i32, %arg1 : i32, i32, i32
  }
}

</mosaic_0001>

<bundles_post_ra>
// kernel: combination_forward.1
= control target key start
LH: loop header
LB: loop body
LE: loop exit
PB: predicated region body
PF: predicated region fallthrough
CT: control target
= control target key end

     0   :  { %s500_s12 = smov 0   ;;  %s502_s13 = smov 0   ;;  %s545_s0 = inlined_call_operand.vmem [shape: f32[16,4,256], index: 0, kind: input, shape index: {}]   ;;  %s546_s1 = inlined_call_operand.vmem [shape: f32[16,4], index: 1, kind: input, shape index: {}]   ;;  %s547_s2 = inlined_call_operand.vmem [shape: f32[16,1], index: 2, kind: input, shape index: {}]   ;;  %s548_s3 = inlined_call_operand.vmem [shape: f32[16,16,256], index: 3, kind: output, shape index: {}]  }
   0x1   :  { %s504_s14 = smov 0  }
   0x2 LB: > { %s25_s15 = sadd.s32 1, %s472_s13  ;;  %p411_p0 = scmp.ge.s32.totalorder %s476_s14, 1  ;;  %s476_s14 = sphi %s504_s14, %s13_s14   ;;  %s472_s13 = sphi %s502_s13, %s550_s13   ;;  %s468_s12 = sphi %s500_s12, %s549_s12  }
   0x3   : > { %p27_p1 = scmp.ge.s32.totalorder %s25_s15, 16  ;;  %p158_p2 = scmp.lt.s32.totalorder %s476_s14, 17 }
   0x5   : > { %s552_s15 = smov (%p27_p1, %s25_s15), 0  ;;  %p159_p3 = pnand %p411_p0, %p158_p2 }
   0x6   : > { %p191_p4 = scmp.lt.s32.totalorder (!%p159_p3), %s468_s12, 15 }
   0x7   : > { %162 = sbr.rel (%p159_p3) target bundleno = 219 (0xdb), region = 32 }
   0xc   : > { %v478_v0 = vmov 0.0   ;;  %v213_v1 = vld [vmem:[%s547_s2] sm:$0xff]  ;;  %s554_s12 = smov (!%p191_p4, %s468_s12), 15  ;;  %v479_v2 = vmov 0   ;;  %v214_v3 = vld [vmem:[%s547_s2 + $0x8] sm:$0xff]  ;;  %vm234_vm0 = vcmask 1043456  }
   0xd   : > { %303 = vmatprep.mubr.f32.mxu0 %v478_v0  ;;  %309 = vmatprep.mubr.f32.mxu1 %v478_v0  ;;  %s422_s18 = sshll.u32 %s554_s12, 3  ;;  %v210_v6 = vld [vmem:[%s546_s1] sm:$0xff]  ;;  %vm227_vm1 = vcmask 31744   ;;  %v211_v7 = vld [vmem:[%s546_s1 + $0x8] sm:$0xff]  ;;  %s423_s28 = sshll.u32 %s554_s12, 5 }
   0xe   : > { %452 = vset.pattern.permute.xlu0 %v479_v2  ;;  %s198_s23 = scalar_lea.vmem %s545_s0, %s422_s18  ;;  %s208_s4 = scalar_lea.vmem %s548_s3, %s423_s28 }
   0xf   : > { %217 = vperm.xlu0 %452, %v213_v1   ;;  %v212_v4 = vld [vmem:[%s198_s23] sm:$0xff] }
  0x10   : > { %v226_v5 = vcombine.high %v212_v4, %v212_v4 }
  0x12   : > { %416 = vmatprep.subr.msk.mxu0 %vm234_vm0, %v226_v5  ;;  %424 = vmatprep.subr.msk.mxu1 %vm234_vm0, %v226_v5 }
  0x13   : > { %222 = vperm.xlu0 %452, %v214_v3   ;;  %417 = vmatpush1.msk.msra.mxu0 %vm234_vm0, %v212_v4 }
  0x14   : > { %425 = vmatpush1.msk.msra.mxu1 %vm234_vm0, %v212_v4  ;;  %418 = vmatmul.mubr.msk.f32.vlgmr.msra.gmra.mxu0 %vm227_vm1, %v210_v6 }
  0x15   : > { %419 = vmatmul.mubr.msk.f32.vlgmr.msra.gmra.mxu1 %vm227_vm1, %v211_v7 }
  0x8a   : > { %v218_v8 = vpop.permute.xlu0 %217 }
  0x8e   : > { %v223_v9 = vpop.permute.xlu0 %222 }
  0xd4   : > { %v305_v10 = vpop.f32.mrf.mxu0 }
  0xd5   : > { %v311_v11 = vpop.f32.mrf.mxu1  ;;  %v306_v12 = vadd.f32 %v305_v10, %v218_v8 }
  0xd6   : > { %v312_v13 = vadd.f32 %v311_v11, %v223_v9  ;;  %v307_v14 = vpop.f32.mrf.mxu0 }
  0xd7   : > { %v313_v15 = vpop.f32.mrf.mxu1  ;;  %316 = vst [vmem:[%s208_s4] sm:$0xff] %v306_v12  ;;  %v308_v16 = vadd.f32 %v307_v14, %v218_v8 }
  0xd8   : > { %318 = vst [vmem:[%s208_s4 + $0x10] sm:$0xff] %v312_v13  ;;  %v314_v17 = vadd.f32 %v313_v15, %v223_v9 }
  0xd9   : > { %317 = vst [vmem:[%s208_s4 + $0x8] sm:$0xff] %v308_v16 }
  0xda   : > { %319 = vst [vmem:[%s208_s4 + $0x18] sm:$0xff] %v314_v17 }
  0xdb PF: > { %s13_s14 = sadd.s32 1, %s476_s14   ;;  %s549_s12 = smov %s472_s13 }
  0xdc   : > { %p10_p5 = scmp.ge.s32.totalorder %s13_s14, 18   ;;  %s550_s13 = smov %s552_s15 }
  0xde   :  { %12 = sbr.rel (!%p10_p5) target bundleno = 2 (0x2), region = 62 }

</bundles_post_ra>
